<compile_context>
chip_gen: v7x
topology: tpu7x:2x2x1
jax: 0.10.0
libtpu: 0.0.40
codegen_flags: <defaults>
</compile_context>

<pallas_src>
import functools
import math

import jax
import jax.numpy as jnp
from jax.experimental import pallas as pl
from jax.experimental.pallas import tpu as pltpu

_LANE = 128


def _round_up(x, m):
    return ((x + m - 1) // m) * m


def _pick_q_tile(q_s):
    """Largest q tile that divides q_s; full q_s when it already fits."""
    if q_s <= 256:
        return q_s
    for t in (256, 128, 64, 32, 16, 8):
        if q_s % t == 0:
            return t
    return q_s


def _mhsa_kernel(mask_ref, vin_ref, kin_ref, qin_ref,
                 wv_ref, wk_ref, wq_ref, wo_ref, out_ref,
                 *, n_heads, head_dim):
    f32 = jnp.float32
    cdt = wv_ref.dtype  # compute dtype of MXU operands (bf16 or f32, set on host)

    # Hoisted once per grid step (not per head); int8 -> i32 before compare so
    # the predicate layout matches the f32 scores.
    masked = mask_ref[...].astype(jnp.int32) == 0          # [q_tile, kv_s] bool

    x_v = vin_ref[0]                                        # [kv_s, kv_dim_p]
    x_k = kin_ref[0]                                        # [kv_s, kv_dim_p]
    x_q = qin_ref[0]                                        # [q_tile, q_dim_p]

    # Fused emb-wide projections (scale already folded into wq on the host).
    V = jnp.dot(x_v, wv_ref[...], preferred_element_type=f32)   # [kv_s,  emb_p]
    K = jnp.dot(x_k, wk_ref[...], preferred_element_type=f32)   # [kv_s,  emb_p]
    Q = jnp.dot(x_q, wq_ref[...], preferred_element_type=f32)   # [q_tile, emb_p]

    Vc = V.astype(cdt)
    Kc = K.astype(cdt)
    Qc = Q.astype(cdt)

    # Per-head scaled-dot-product attention; head_dim is the only small
    # contraction dim here (unpadded — the MXU handles it internally).
    heads = []
    for h in range(n_heads):
        lo, hi = h * head_dim, (h + 1) * head_dim
        Qh = Qc[:, lo:hi]                                   # [q_tile, hd]
        Kh = Kc[:, lo:hi]                                   # [kv_s,   hd]
        Vh = Vc[:, lo:hi]                                   # [kv_s,   hd]

        S = jnp.einsum('qd,kd->qk', Qh, Kh,
                       preferred_element_type=f32)          # [q_tile, kv_s]
        # Exact PyTorch semantics: masked_fill(mask == 0, 1e-20) BEFORE softmax
        # (NOT -inf) — faithfully replicated from the module.
        S = jnp.where(masked, jnp.float32(1e-20), S)
        S = S - jnp.max(S, axis=-1, keepdims=True)
        P = jnp.exp(S)
        P = P * pl.reciprocal(jnp.sum(P, axis=-1, keepdims=True), approx=True)

        heads.append(jnp.dot(P.astype(cdt), Vh,
                             preferred_element_type=f32))   # [q_tile, hd]

    # concat(heads) -> [q_tile, emb], then ONE fused output projection.
    attn = jnp.concatenate(heads, axis=-1)
    out = jnp.dot(attn.astype(cdt), wo_ref[...],
                  preferred_element_type=f32)               # [q_tile, q_dim_p]
    out_ref[0] = out.astype(out_ref.dtype)


@functools.partial(jax.jit, static_argnames=("n_heads", "compute_dtype"))
def mhsa_forward(v_in, k_in, q_in, mask, Wv, Wk, Wq, Wo, *, n_heads,
                 compute_dtype=jnp.bfloat16):
    """Pallas implementation of MultiHeadSelfAttentionBlock.forward.

    Args:
      v_in:  [b, kv_s, kv_dim] f32     k_in: [b, kv_s, kv_dim] f32
      q_in:  [b, q_s,  q_dim ] f32     mask: [q_s, kv_s] int (0 = masked)
      Wv,Wk: [emb, kv_dim]  Wq: [emb, q_dim]  Wo: [q_dim, emb]  (nn.Linear layout)
      compute_dtype: dtype of MXU operands (accumulation is always f32).
    Returns: [b, q_s, q_dim] f32
    """
    b, kv_s, kv_dim = v_in.shape
    _, q_s, q_dim = q_in.shape
    emb = Wv.shape[0]
    head_dim = emb // n_heads
    assert head_dim * n_heads == emb
    scale = 1.0 / math.sqrt(head_dim)

    # Lane-dense padded feature dims (zero padding keeps the math exact).
    kv_dim_p = _round_up(kv_dim, _LANE)
    q_dim_p = _round_up(q_dim, _LANE)
    emb_p = _round_up(emb, _LANE)

    def pad_last(x, tgt):
        p = tgt - x.shape[-1]
        return x if p == 0 else jnp.pad(x, [(0, 0)] * (x.ndim - 1) + [(0, p)])

    # Host-side prep: pad + cast operands once (half the DMA bytes in bf16).
    v_p = pad_last(v_in, kv_dim_p).astype(compute_dtype)
    k_p = pad_last(k_in, kv_dim_p).astype(compute_dtype)
    q_p = pad_last(q_in, q_dim_p).astype(compute_dtype)

    # Fused-projection weights: W^T padded to [in_dim_p, emb_p]; no head split,
    # no head_dim padding.  Scale folded into Wq.
    WvT = jnp.pad(Wv.T, ((0, kv_dim_p - kv_dim), (0, emb_p - emb))).astype(compute_dtype)
    WkT = jnp.pad(Wk.T, ((0, kv_dim_p - kv_dim), (0, emb_p - emb))).astype(compute_dtype)
    WqT = jnp.pad(Wq.T * scale, ((0, q_dim_p - q_dim), (0, emb_p - emb))).astype(compute_dtype)
    # Output projection: concat(heads) @ Wo.T, so we need Wo.T [emb, q_dim_p]
    # (contraction dim = real emb; only the output lanes are padded).
    WoT = jnp.pad(Wo.T, ((0, 0), (0, q_dim_p - q_dim))).astype(compute_dtype)

    mask_i8 = mask.astype(jnp.int8)

    q_tile = _pick_q_tile(q_s)
    n_q_tiles = q_s // q_tile

    kernel = functools.partial(_mhsa_kernel, n_heads=n_heads, head_dim=head_dim)

    grid_spec = pltpu.PrefetchScalarGridSpec(
        num_scalar_prefetch=0,
        grid=(b, n_q_tiles),
        in_specs=[
            pl.BlockSpec((q_tile, kv_s), lambda i, j: (j, 0)),            # mask (i8)
            pl.BlockSpec((1, kv_s, kv_dim_p), lambda i, j: (i, 0, 0)),    # v_in
            pl.BlockSpec((1, kv_s, kv_dim_p), lambda i, j: (i, 0, 0)),    # k_in
            pl.BlockSpec((1, q_tile, q_dim_p), lambda i, j: (i, j, 0)),   # q_in
            pl.BlockSpec((kv_dim_p, emb_p), lambda i, j: (0, 0)),         # Wv^T
            pl.BlockSpec((kv_dim_p, emb_p), lambda i, j: (0, 0)),         # Wk^T
            pl.BlockSpec((q_dim_p, emb_p), lambda i, j: (0, 0)),          # Wq^T * scale
            pl.BlockSpec((emb, q_dim_p), lambda i, j: (0, 0)),            # Wo^T
        ],
        out_specs=pl.BlockSpec((1, q_tile, q_dim_p), lambda i, j: (i, j, 0)),
    )

    out_p = pl.pallas_call(
        kernel,
        out_shape=jax.ShapeDtypeStruct((b, q_s, q_dim_p), jnp.float32),
        grid_spec=grid_spec,
        compiler_params=pltpu.CompilerParams(
            dimension_semantics=("parallel", "parallel")),
    )(mask_i8, v_p, k_p, q_p, WvT, WkT, WqT, WoT)

    return out_p[:, :, :q_dim]


def mhsa_reference(v_in, k_in, q_in, mask, Wv, Wk, Wq, Wo, n_heads):
    """Plain-JAX f32 reference mirroring the PyTorch module exactly."""
    b, kv_s, _ = v_in.shape
    _, q_s, _ = q_in.shape
    emb = Wv.shape[0]
    hd = emb // n_heads
    scale = 1.0 / math.sqrt(hd)
    V = v_in @ Wv.T
    K = k_in @ Wk.T
    Q = q_in @ Wq.T
    Vh = V.reshape(b, kv_s, n_heads, hd).transpose(2, 0, 1, 3)
    Kh = K.reshape(b, kv_s, n_heads, hd).transpose(2, 0, 1, 3)
    Qh = Q.reshape(b, q_s, n_heads, hd).transpose(2, 0, 1, 3)
    outs = []
    for h in range(n_heads):
        A = jnp.einsum("bqd,bkd->bqk", Qh[h], Kh[h]) * scale
        A = jnp.where(mask[None] == 0, jnp.float32(1e-20), A)
        A = jax.nn.softmax(A, axis=-1)
        outs.append(jnp.einsum("bqk,bkd->bqd", A, Vh[h]))
    cat = jnp.concatenate(outs, axis=2)
    return cat @ Wo.T


if __name__ == "__main__":
    # Small, module-consistent shapes.
    batch = 2
    q_seq = 8
    kv_seq = 8
    q_vector_dim = 16
    kv_vector_dim = 16
    embedding_dim = 32
    n_heads = 4

    key = jax.random.PRNGKey(0)
    k1, k2, k3, k4, k5, k6, k7, k8 = jax.random.split(key, 8)

    v_in = jax.random.normal(k1, (batch, kv_seq, kv_vector_dim), jnp.float32)
    k_in = jax.random.normal(k2, (batch, kv_seq, kv_vector_dim), jnp.float32)
    q_in = jax.random.normal(k3, (batch, q_seq, q_vector_dim), jnp.float32)
    # Binary mask (0 = masked); includes zeros to exercise the masked_fill path.
    mask = (jax.random.uniform(k4, (q_seq, kv_seq)) > 0.2).astype(jnp.int32)

    # Deterministic "nn.Linear" weights (out_features, in_features), no bias.
    def init_w(k, out_f, in_f):
        bound = 1.0 / math.sqrt(in_f)
        return jax.random.uniform(k, (out_f, in_f), jnp.float32, -bound, bound)

    Wv = init_w(k5, embedding_dim, kv_vector_dim)
    Wk = init_w(k6, embedding_dim, kv_vector_dim)
    Wq = init_w(k7, embedding_dim, q_vector_dim)
    Wo = init_w(k8, q_vector_dim, embedding_dim)

    ref = mhsa_reference(v_in, k_in, q_in, mask, Wv, Wk, Wq, Wo, n_heads)

    # f32-operand path: tight check (only the approx EUP reciprocal differs).
    out_f32 = jax.block_until_ready(
        mhsa_forward(v_in, k_in, q_in, mask, Wv, Wk, Wq, Wo,
                     n_heads=n_heads, compute_dtype=jnp.float32))
    assert out_f32.shape == (batch, q_seq, q_vector_dim)
    assert jnp.allclose(out_f32, ref, atol=1e-2, rtol=1e-2), "f32 mismatch vs reference"

    # Default bf16-operand fast path (f32 accumulation): bf16-class tolerance.
    out_bf16 = jax.block_until_ready(
        mhsa_forward(v_in, k_in, q_in, mask, Wv, Wk, Wq, Wo, n_heads=n_heads))
    assert out_bf16.shape == (batch, q_seq, q_vector_dim)
    assert jnp.allclose(out_bf16, ref, atol=3e-2, rtol=3e-2), "bf16 mismatch vs reference"

    print("KERNEL_OK")
</pallas_src>

<mosaic_0001>
module attributes {stable_mosaic.version = 11 : i64} {
  func.func @_mhsa_kernel(%arg0: i32, %arg1: i32, %arg2: memref<8x8xi8, #tpu.memory_space<vmem>>, %arg3: memref<1x8x128xf32, #tpu.memory_space<vmem>>, %arg4: memref<1x8x128xf32, #tpu.memory_space<vmem>>, %arg5: memref<1x8x128xf32, #tpu.memory_space<vmem>>, %arg6: memref<128x128xf32, #tpu.memory_space<vmem>>, %arg7: memref<128x128xf32, #tpu.memory_space<vmem>>, %arg8: memref<128x128xf32, #tpu.memory_space<vmem>>, %arg9: memref<32x128xf32, #tpu.memory_space<vmem>>, %arg10: memref<1x8x128xf32, #tpu.memory_space<vmem>>) attributes {dimension_semantics = [#tpu.dimension_semantics<parallel>, #tpu.dimension_semantics<parallel>], iteration_bounds = array<i64: 2, 1>, scalar_prefetch = 0 : i64, scratch_operands = 0 : i64, tpu.core_type = #tpu.core_type<tc>, window_params = [{transform_indices = @transform_0, window_bounds = array<i64: 8, 8>}, {transform_indices = @transform_1, window_bounds = array<i64: 1, 8, 128>}, {transform_indices = @transform_2, window_bounds = array<i64: 1, 8, 128>}, {transform_indices = @transform_3, window_bounds = array<i64: 1, 8, 128>}, {pipeline_mode = #tpu.pipeline_mode<synchronous>, transform_indices = @transform_4, window_bounds = array<i64: 128, 128>}, {pipeline_mode = #tpu.pipeline_mode<synchronous>, transform_indices = @transform_5, window_bounds = array<i64: 128, 128>}, {pipeline_mode = #tpu.pipeline_mode<synchronous>, transform_indices = @transform_6, window_bounds = array<i64: 128, 128>}, {pipeline_mode = #tpu.pipeline_mode<synchronous>, transform_indices = @transform_7, window_bounds = array<i64: 32, 128>}, {transform_indices = @transform_8, window_bounds = array<i64: 1, 8, 128>}]} {
    %c0 = arith.constant 0 : index
    %c0_0 = arith.constant 0 : index
    %0 = vector.load %arg2[%c0, %c0_0] : memref<8x8xi8, #tpu.memory_space<vmem>>, vector<8x8xi8>
    %1 = arith.extsi %0 : vector<8x8xi8> to vector<8x8xi32>
    %c0_i32 = arith.constant 0 : i32
    %2 = vector.broadcast %c0_i32 : i32 to vector<8x8xi32>
    %3 = arith.cmpi eq, %1, %2 : vector<8x8xi32>
    %c0_1 = arith.constant 0 : index
    %c0_2 = arith.constant 0 : index
    %c0_3 = arith.constant 0 : index
    %4 = vector.load %arg3[%c0_1, %c0_2, %c0_3] : memref<1x8x128xf32, #tpu.memory_space<vmem>>, vector<1x8x128xf32>
    %5 = vector.shape_cast %4 : vector<1x8x128xf32> to vector<8x128xf32>
    %c0_4 = arith.constant 0 : index
    %c0_5 = arith.constant 0 : index
    %c0_6 = arith.constant 0 : index
    %6 = vector.load %arg4[%c0_4, %c0_5, %c0_6] : memref<1x8x128xf32, #tpu.memory_space<vmem>>, vector<1x8x128xf32>
    %7 = vector.shape_cast %6 : vector<1x8x128xf32> to vector<8x128xf32>
    %c0_7 = arith.constant 0 : index
    %c0_8 = arith.constant 0 : index
    %c0_9 = arith.constant 0 : index
    %8 = vector.load %arg5[%c0_7, %c0_8, %c0_9] : memref<1x8x128xf32, #tpu.memory_space<vmem>>, vector<1x8x128xf32>
    %9 = vector.shape_cast %8 : vector<1x8x128xf32> to vector<8x128xf32>
    %c0_10 = arith.constant 0 : index
    %c0_11 = arith.constant 0 : index
    %10 = vector.load %arg6[%c0_10, %c0_11] : memref<128x128xf32, #tpu.memory_space<vmem>>, vector<128x128xf32>
    %cst = arith.constant dense<0.000000e+00> : vector<8x128xf32>
    %11 = tpu.matmul %5, %10, %cst {dimension_numbers = #tpu.dot_dimension_numbers<[1], [0], [0], [1], [0, 0, 1, 1], [], []>} : vector<8x128xf32>, vector<128x128xf32>, vector<8x128xf32> -> vector<8x128xf32>
    %c0_12 = arith.constant 0 : index
    %c0_13 = arith.constant 0 : index
    %12 = vector.load %arg7[%c0_12, %c0_13] : memref<128x128xf32, #tpu.memory_space<vmem>>, vector<128x128xf32>
    %cst_14 = arith.constant dense<0.000000e+00> : vector<8x128xf32>
    %13 = tpu.matmul %7, %12, %cst_14 {dimension_numbers = #tpu.dot_dimension_numbers<[1], [0], [0], [1], [0, 0, 1, 1], [], []>} : vector<8x128xf32>, vector<128x128xf32>, vector<8x128xf32> -> vector<8x128xf32>
    %c0_15 = arith.constant 0 : index
    %c0_16 = arith.constant 0 : index
    %14 = vector.load %arg8[%c0_15, %c0_16] : memref<128x128xf32, #tpu.memory_space<vmem>>, vector<128x128xf32>
    %cst_17 = arith.constant dense<0.000000e+00> : vector<8x128xf32>
    %15 = tpu.matmul %9, %14, %cst_17 {dimension_numbers = #tpu.dot_dimension_numbers<[1], [0], [0], [1], [0, 0, 1, 1], [], []>} : vector<8x128xf32>, vector<128x128xf32>, vector<8x128xf32> -> vector<8x128xf32>
    %16 = vector.extract_strided_slice %15 {offsets = [0, 0], sizes = [8, 8], strides = [1, 1]} : vector<8x128xf32> to vector<8x8xf32>
    %17 = vector.extract_strided_slice %13 {offsets = [0, 0], sizes = [8, 8], strides = [1, 1]} : vector<8x128xf32> to vector<8x8xf32>
    %18 = vector.extract_strided_slice %11 {offsets = [0, 0], sizes = [8, 8], strides = [1, 1]} : vector<8x128xf32> to vector<8x8xf32>
    "tpu.trace_start"() <{level = 10 : i32, message = "qd,kd->qk"}> : () -> ()
    %cst_18 = arith.constant dense<0.000000e+00> : vector<8x8xf32>
    %19 = tpu.matmul %16, %17, %cst_18 {dimension_numbers = #tpu.dot_dimension_numbers<[1], [1], [0], [0], [0, 0, 1, 0], [], []>} : vector<8x8xf32>, vector<8x8xf32>, vector<8x8xf32> -> vector<8x8xf32>
    %cst_19 = arith.constant 9.99999968E-21 : f32
    "tpu.trace_stop"() : () -> ()
    %20 = vector.broadcast %cst_19 : f32 to vector<8x8xf32>
    %21 = arith.select %3, %20, %19 : vector<8x8xi1>, vector<8x8xf32>
    %cst_20 = arith.constant dense<0xFF800000> : vector<8xf32>
    %22 = vector.multi_reduction <maximumf>, %21, %cst_20 [1] : vector<8x8xf32> to vector<8xf32>
    %23 = vector.shape_cast %22 : vector<8xf32> to vector<8x1xf32>
    %24 = vector.broadcast %23 : vector<8x1xf32> to vector<8x8xf32>
    %25 = arith.subf %21, %24 : vector<8x8xf32>
    %26 = math.exp %25 : vector<8x8xf32>
    %cst_21 = arith.constant dense<0.000000e+00> : vector<8xf32>
    %27 = vector.multi_reduction <add>, %26, %cst_21 [1] : vector<8x8xf32> to vector<8xf32>
    %28 = vector.shape_cast %27 : vector<8xf32> to vector<8x1xf32>
    %29 = tpu.reciprocal %28 {approx = true} : vector<8x1xf32> -> vector<8x1xf32>
    %30 = vector.broadcast %29 : vector<8x1xf32> to vector<8x8xf32>
    %31 = arith.mulf %26, %30 : vector<8x8xf32>
    %cst_22 = arith.constant dense<0.000000e+00> : vector<8x8xf32>
    %32 = tpu.matmul %31, %18, %cst_22 {dimension_numbers = #tpu.dot_dimension_numbers<[1], [0], [0], [1], [0, 0, 1, 1], [], []>} : vector<8x8xf32>, vector<8x8xf32>, vector<8x8xf32> -> vector<8x8xf32>
    %33 = vector.extract_strided_slice %15 {offsets = [0, 8], sizes = [8, 8], strides = [1, 1]} : vector<8x128xf32> to vector<8x8xf32>
    %34 = vector.extract_strided_slice %13 {offsets = [0, 8], sizes = [8, 8], strides = [1, 1]} : vector<8x128xf32> to vector<8x8xf32>
    %35 = vector.extract_strided_slice %11 {offsets = [0, 8], sizes = [8, 8], strides = [1, 1]} : vector<8x128xf32> to vector<8x8xf32>
    "tpu.trace_start"() <{level = 10 : i32, message = "qd,kd->qk"}> : () -> ()
    %cst_23 = arith.constant dense<0.000000e+00> : vector<8x8xf32>
    %36 = tpu.matmul %33, %34, %cst_23 {dimension_numbers = #tpu.dot_dimension_numbers<[1], [1], [0], [0], [0, 0, 1, 0], [], []>} : vector<8x8xf32>, vector<8x8xf32>, vector<8x8xf32> -> vector<8x8xf32>
    %cst_24 = arith.constant 9.99999968E-21 : f32
    "tpu.trace_stop"() : () -> ()
    %37 = vector.broadcast %cst_24 : f32 to vector<8x8xf32>
    %38 = arith.select %3, %37, %36 : vector<8x8xi1>, vector<8x8xf32>
    %cst_25 = arith.constant dense<0xFF800000> : vector<8xf32>
    %39 = vector.multi_reduction <maximumf>, %38, %cst_25 [1] : vector<8x8xf32> to vector<8xf32>
    %40 = vector.shape_cast %39 : vector<8xf32> to vector<8x1xf32>
    %41 = vector.broadcast %40 : vector<8x1xf32> to vector<8x8xf32>
    %42 = arith.subf %38, %41 : vector<8x8xf32>
    %43 = math.exp %42 : vector<8x8xf32>
    %cst_26 = arith.constant dense<0.000000e+00> : vector<8xf32>
    %44 = vector.multi_reduction <add>, %43, %cst_26 [1] : vector<8x8xf32> to vector<8xf32>
    %45 = vector.shape_cast %44 : vector<8xf32> to vector<8x1xf32>
    %46 = tpu.reciprocal %45 {approx = true} : vector<8x1xf32> -> vector<8x1xf32>
    %47 = vector.broadcast %46 : vector<8x1xf32> to vector<8x8xf32>
    %48 = arith.mulf %43, %47 : vector<8x8xf32>
    %cst_27 = arith.constant dense<0.000000e+00> : vector<8x8xf32>
    %49 = tpu.matmul %48, %35, %cst_27 {dimension_numbers = #tpu.dot_dimension_numbers<[1], [0], [0], [1], [0, 0, 1, 1], [], []>} : vector<8x8xf32>, vector<8x8xf32>, vector<8x8xf32> -> vector<8x8xf32>
    %50 = vector.extract_strided_slice %15 {offsets = [0, 16], sizes = [8, 8], strides = [1, 1]} : vector<8x128xf32> to vector<8x8xf32>
    %51 = vector.extract_strided_slice %13 {offsets = [0, 16], sizes = [8, 8], strides = [1, 1]} : vector<8x128xf32> to vector<8x8xf32>
    %52 = vector.extract_strided_slice %11 {offsets = [0, 16], sizes = [8, 8], strides = [1, 1]} : vector<8x128xf32> to vector<8x8xf32>
    "tpu.trace_start"() <{level = 10 : i32, message = "qd,kd->qk"}> : () -> ()
    %cst_28 = arith.constant dense<0.000000e+00> : vector<8x8xf32>
    %53 = tpu.matmul %50, %51, %cst_28 {dimension_numbers = #tpu.dot_dimension_numbers<[1], [1], [0], [0], [0, 0, 1, 0], [], []>} : vector<8x8xf32>, vector<8x8xf32>, vector<8x8xf32> -> vector<8x8xf32>
    %cst_29 = arith.constant 9.99999968E-21 : f32
    "tpu.trace_stop"() : () -> ()
    %54 = vector.broadcast %cst_29 : f32 to vector<8x8xf32>
    %55 = arith.select %3, %54, %53 : vector<8x8xi1>, vector<8x8xf32>
    %cst_30 = arith.constant dense<0xFF800000> : vector<8xf32>
    %56 = vector.multi_reduction <maximumf>, %55, %cst_30 [1] : vector<8x8xf32> to vector<8xf32>
    %57 = vector.shape_cast %56 : vector<8xf32> to vector<8x1xf32>
    %58 = vector.broadcast %57 : vector<8x1xf32> to vector<8x8xf32>
    %59 = arith.subf %55, %58 : vector<8x8xf32>
    %60 = math.exp %59 : vector<8x8xf32>
    %cst_31 = arith.constant dense<0.000000e+00> : vector<8xf32>
    %61 = vector.multi_reduction <add>, %60, %cst_31 [1] : vector<8x8xf32> to vector<8xf32>
    %62 = vector.shape_cast %61 : vector<8xf32> to vector<8x1xf32>
    %63 = tpu.reciprocal %62 {approx = true} : vector<8x1xf32> -> vector<8x1xf32>
    %64 = vector.broadcast %63 : vector<8x1xf32> to vector<8x8xf32>
    %65 = arith.mulf %60, %64 : vector<8x8xf32>
    %cst_32 = arith.constant dense<0.000000e+00> : vector<8x8xf32>
    %66 = tpu.matmul %65, %52, %cst_32 {dimension_numbers = #tpu.dot_dimension_numbers<[1], [0], [0], [1], [0, 0, 1, 1], [], []>} : vector<8x8xf32>, vector<8x8xf32>, vector<8x8xf32> -> vector<8x8xf32>
    %67 = vector.extract_strided_slice %15 {offsets = [0, 24], sizes = [8, 8], strides = [1, 1]} : vector<8x128xf32> to vector<8x8xf32>
    %68 = vector.extract_strided_slice %13 {offsets = [0, 24], sizes = [8, 8], strides = [1, 1]} : vector<8x128xf32> to vector<8x8xf32>
    %69 = vector.extract_strided_slice %11 {offsets = [0, 24], sizes = [8, 8], strides = [1, 1]} : vector<8x128xf32> to vector<8x8xf32>
    "tpu.trace_start"() <{level = 10 : i32, message = "qd,kd->qk"}> : () -> ()
    %cst_33 = arith.constant dense<0.000000e+00> : vector<8x8xf32>
    %70 = tpu.matmul %67, %68, %cst_33 {dimension_numbers = #tpu.dot_dimension_numbers<[1], [1], [0], [0], [0, 0, 1, 0], [], []>} : vector<8x8xf32>, vector<8x8xf32>, vector<8x8xf32> -> vector<8x8xf32>
    %cst_34 = arith.constant 9.99999968E-21 : f32
    "tpu.trace_stop"() : () -> ()
    %71 = vector.broadcast %cst_34 : f32 to vector<8x8xf32>
    %72 = arith.select %3, %71, %70 : vector<8x8xi1>, vector<8x8xf32>
    %cst_35 = arith.constant dense<0xFF800000> : vector<8xf32>
    %73 = vector.multi_reduction <maximumf>, %72, %cst_35 [1] : vector<8x8xf32> to vector<8xf32>
    %74 = vector.shape_cast %73 : vector<8xf32> to vector<8x1xf32>
    %75 = vector.broadcast %74 : vector<8x1xf32> to vector<8x8xf32>
    %76 = arith.subf %72, %75 : vector<8x8xf32>
    %77 = math.exp %76 : vector<8x8xf32>
    %cst_36 = arith.constant dense<0.000000e+00> : vector<8xf32>
    %78 = vector.multi_reduction <add>, %77, %cst_36 [1] : vector<8x8xf32> to vector<8xf32>
    %79 = vector.shape_cast %78 : vector<8xf32> to vector<8x1xf32>
    %80 = tpu.reciprocal %79 {approx = true} : vector<8x1xf32> -> vector<8x1xf32>
    %81 = vector.broadcast %80 : vector<8x1xf32> to vector<8x8xf32>
    %82 = arith.mulf %77, %81 : vector<8x8xf32>
    %cst_37 = arith.constant dense<0.000000e+00> : vector<8x8xf32>
    %83 = tpu.matmul %82, %69, %cst_37 {dimension_numbers = #tpu.dot_dimension_numbers<[1], [0], [0], [1], [0, 0, 1, 1], [], []>} : vector<8x8xf32>, vector<8x8xf32>, vector<8x8xf32> -> vector<8x8xf32>
    %84 = tpu.concatenate %32, %49, %66, %83 in 1 : vector<8x8xf32>, vector<8x8xf32>, vector<8x8xf32>, vector<8x8xf32> -> vector<8x32xf32>
    %c0_38 = arith.constant 0 : index
    %c0_39 = arith.constant 0 : index
    %85 = vector.load %arg9[%c0_38, %c0_39] : memref<32x128xf32, #tpu.memory_space<vmem>>, vector<32x128xf32>
    %cst_40 = arith.constant dense<0.000000e+00> : vector<8x128xf32>
    %86 = tpu.matmul %84, %85, %cst_40 {dimension_numbers = #tpu.dot_dimension_numbers<[1], [0], [0], [1], [0, 0, 1, 1], [], []>} : vector<8x32xf32>, vector<32x128xf32>, vector<8x128xf32> -> vector<8x128xf32>
    %c0_41 = arith.constant 0 : index
    %c0_42 = arith.constant 0 : index
    %c0_43 = arith.constant 0 : index
    %87 = vector.load %arg10[%c0_41, %c0_42, %c0_43] : memref<1x8x128xf32, #tpu.memory_space<vmem>>, vector<1x8x128xf32>
    %88 = vector.shape_cast %87 : vector<1x8x128xf32> to vector<8x128xf32>
    %89 = vector.shape_cast %86 : vector<8x128xf32> to vector<1x8x128xf32>
    tpu.vector_store %arg10[%c0_41, %c0_42, %c0_43], %89 {strides = array<i32>} : memref<1x8x128xf32, #tpu.memory_space<vmem>>, vector<1x8x128xf32>,
    return
  }
  func.func @transform_0(%arg0: i32, %arg1: i32) -> (i32, i32) {
    %c0_i32 = arith.constant 0 : i32
    %c0_i32_0 = arith.constant 0 : i32
    return %arg1, %c0_i32 : i32, i32
  }
  func.func @transform_1(%arg0: i32, %arg1: i32) -> (i32, i32, i32) {
    %c0_i32 = arith.constant 0 : i32
    %c0_i32_0 = arith.constant 0 : i32
    %c0_i32_1 = arith.constant 0 : i32
    return %arg0, %c0_i32, %c0_i32_0 : i32, i32, i32
  }
  func.func @transform_2(%arg0: i32, %arg1: i32) -> (i32, i32, i32) {
    %c0_i32 = arith.constant 0 : i32
    %c0_i32_0 = arith.constant 0 : i32
    %c0_i32_1 = arith.constant 0 : i32
    return %arg0, %c0_i32, %c0_i32_0 : i32, i32, i32
  }
  func.func @transform_3(%arg0: i32, %arg1: i32) -> (i32, i32, i32) {
    %c0_i32 = arith.constant 0 : i32
    %c0_i32_0 = arith.constant 0 : i32
    return %arg0, %arg1, %c0_i32 : i32, i32, i32
  }
  func.func @transform_4(%arg0: i32, %arg1: i32) -> (i32, i32) {
    %c0_i32 = arith.constant 0 : i32
    %c0_i32_0 = arith.constant 0 : i32
    %c0_i32_1 = arith.constant 0 : i32
    return %c0_i32, %c0_i32_0 : i32, i32
  }
  func.func @transform_5(%arg0: i32, %arg1: i32) -> (i32, i32) {
    %c0_i32 = arith.constant 0 : i32
    %c0_i32_0 = arith.constant 0 : i32
    %c0_i32_1 = arith.constant 0 : i32
    return %c0_i32, %c0_i32_0 : i32, i32
  }
  func.func @transform_6(%arg0: i32, %arg1: i32) -> (i32, i32) {
    %c0_i32 = arith.constant 0 : i32
    %c0_i32_0 = arith.constant 0 : i32
    %c0_i32_1 = arith.constant 0 : i32
    return %c0_i32, %c0_i32_0 : i32, i32
  }
  func.func @transform_7(%arg0: i32, %arg1: i32) -> (i32, i32) {
    %c0_i32 = arith.constant 0 : i32
    %c0_i32_0 = arith.constant 0 : i32
    %c0_i32_1 = arith.constant 0 : i32
    return %c0_i32, %c0_i32_0 : i32, i32
  }
  func.func @transform_8(%arg0: i32, %arg1: i32) -> (i32, i32, i32) {
    %c0_i32 = arith.constant 0 : i32
    %c0_i32_0 = arith.constant 0 : i32
    return %arg0, %arg1, %c0_i32 : i32, i32, i32
  }
}

</mosaic_0001>

<bundles_post_ra>
// kernel: mhsa_forward.1
= control target key start
LH: loop header
LB: loop body
LE: loop exit
PB: predicated region body
PF: predicated region fallthrough
CT: control target
= control target key end

     0   :  { %13 = vsyncpa [#allocation3], 0  ;;  %s2465_s0 = inlined_call_operand.vmem [shape: s8[8,8], index: 0, kind: input, shape index: {}]   ;;  %s2466_s1 = inlined_call_operand.vmem [shape: f32[2,8,128], index: 1, kind: input, shape index: {}]   ;;  %s2467_s2 = inlined_call_operand.vmem [shape: f32[2,8,128], index: 2, kind: input, shape index: {}]   ;;  %s2468_s3 = inlined_call_operand.vmem [shape: f32[2,8,128], index: 3, kind: input, shape index: {}]   ;;  %s2469_s4 = inlined_call_operand.vmem [shape: f32[128,128], index: 4, kind: input, shape index: {}]   ;;  %s2470_s5 = inlined_call_operand.vmem [shape: f32[128,128], index: 5, kind: input, shape index: {}]   ;;  %s2471_s6 = inlined_call_operand.vmem [shape: f32[128,128], index: 6, kind: input, shape index: {}]   ;;  %s2472_s7 = inlined_call_operand.vmem [shape: f32[32,128], index: 7, kind: input, shape index: {}]   ;;  %s2473_s8 = inlined_call_operand.hbm [shape: f32[2,8,128], index: 8, kind: output, shape index: {}]  }
   0x1   :  { %15 = vsyncpa [#allocation3 + $0x1], 0  ;;  %s2071_s27 = smov 0   ;;  %s2073_s28 = smov 0  }
   0x2   :  { %s2075_s29 = smov 0   ;;  %s2077_s30 = smov 0  }
   0x3   :  { %s2079_s9 = smov 0   ;;  %s2081_s10 = smov 0  }
   0x4 LB: > { %s1523_s11 = sadd.s32 4294967295, %s2014_s10   ;;  %s1524_s12 = sadd.s32 4294967294, %s2014_s10   ;;  %s2014_s10 = sphi %s2081_s10, %s21_s10   ;;  %s2010_s9 = sphi %s2079_s9, %s2482_s9   ;;  %s2006_s30 = sphi %s2077_s30, %s2481_s30   ;;  %s2002_s29 = sphi %s2075_s29, %s2480_s29   ;;  %s1998_s28 = sphi %s2073_s28, %s2479_s28   ;;  %s1994_s27 = sphi %s2071_s27, %s2478_s27  }
   0x5   : > { %s33_s13 = sadd.s32 1, %s2010_s9  ;;  %s232_s14 = sadd.s32 1, %s2002_s29 }
   0x6   : > { %p35_p0 = scmp.ge.s32.totalorder %s33_s13, 2  ;;  %p242_p1 = scmp.ne.s32.totalorder %s2002_s29, %s1998_s28 }
   0x7   : > { %p243_p2 = scmp.eq.s32.totalorder %s1523_s11, 1  ;;  %p248_p3 = scmp.ne.s32.totalorder %s1998_s28, %s1994_s27 }
   0x8   : > { %s2484_s13 = smov (%p35_p0, %s33_s13), 0  ;;  %p249_p5 = scmp.eq.s32.totalorder %s1524_s12, 1 }
   0x9   : > { %p2111_p4 = por %p243_p2, %p242_p1  ;;  %s227_s16 = ssub.s32 %s2010_s9, %s2484_s13 }
   0xa   : > { %p1528_p6 = scmp.ge.s32.totalorder %s2014_s10, 1  ;;  %p230_p7 = scmp.eq.s32.totalorder %s227_s16, 0 }
   0xb   : > { %p2118_p8 = por %p249_p5, %p248_p3  ;;  %p310_p9 = scmp.lt.s32.totalorder %s2014_s10, 3 }
   0xc   : > { %s2124_s18 = scalar_select %p230_p7, %s2002_s29, %s232_s14  }
   0xd   : > { %p311_p10 = pnand %p1528_p6, %p310_p9 }
   0xe   : > { %v383_v0 = vld [vmem:[%s2469_s4] sm:$0xff] (!%p311_p10)  ;;  %v384_v1 = vld [vmem:[%s2469_s4 + $0x8] sm:$0xff] (!%p311_p10)  ;;  %v385_v2 = vld [vmem:[%s2469_s4 + $0x10] sm:$0xff] (!%p311_p10)  ;;  %v2016_v3 = vmov (!%p311_p10), 0.0|0.0   ;;  %vm2017_vm0 = vmmov (!%p311_p10), 0   ;;  %v2018_v6 = vmov (!%p311_p10), 0.0  }
   0xf   : > { %314 = sbr.rel (%p311_p10) target bundleno = 2966 (0xb96), region = 52  ;;  %1778 = vmatprep.subr.bf16.mxu0 (!%p311_p10), %v2016_v3  ;;  %v1779_v4 = vpack.c.bf16 (!%p311_p10), %v384_v1, %v383_v0  ;;  %v386_v5 = vld [vmem:[%s2469_s4 + $0x18] sm:$0xff] (!%p311_p10)  ;;  %1802 = vmatprep.subr.bf16.mxu1 (!%p311_p10), %v2016_v3  ;;  %v387_v8 = vld [vmem:[%s2469_s4 + $0x20] sm:$0xff] (!%p311_p10)  ;;  %v388_v9 = vld [vmem:[%s2469_s4 + $0x28] sm:$0xff] (!%p311_p10)  ;;  %p362_p11 = scmp.lt.s32.totalorder (!%p311_p10), %s2006_s30, 1  ;;  %vm641_vm1 = vcmask (!%p311_p10), 64512  }
  0x10   : > { %1654 = vmatprep.mubr.msk.f32.mxu0 (!%p311_p10), %vm2017_vm0, %v2018_v6  ;;  %1689 = vmatprep.mubr.msk.f32.mxu1 (!%p311_p10), %vm2017_vm0, %v2018_v6  ;;  %v1782_v7 = vpack.c.bf16 (!%p311_p10), %v386_v5, %v385_v2  ;;  %v469_v10 = vld [vmem:[%s2470_s5] sm:$0xff] (!%p311_p10)  ;;  %v470_v11 = vld [vmem:[%s2470_s5 + $0x8] sm:$0xff] (!%p311_p10)  ;;  %v471_v13 = vld [vmem:[%s2470_s5 + $0x10] sm:$0xff] (!%p311_p10)  ;;  %v1785_v15 = vpack.c.bf16 (!%p311_p10), %v388_v9, %v387_v8  ;;  %s2019_s23 = smov (!%p311_p10), 120   ;;  %s2020_s25 = smov (!%p311_p10), 112   ;;  %vm1315_vm3 = vcmask (!%p311_p10), 130048  }
  0x11   : > { %1780 = vmatpush3.bf16.msra.mxu0 (!%p311_p10), %v1779_v4  ;;  %v1803_v12 = vpack.c.bf16 (!%p311_p10), %v470_v11, %v469_v10  ;;  %v472_v14 = vld [vmem:[%s2470_s5 + $0x18] sm:$0xff] (!%p311_p10)  ;;  %v389_v16 = vld [vmem:[%s2469_s4 + $0x30] sm:$0xff] (!%p311_p10)  ;;  %v473_v19 = vld [vmem:[%s2470_s5 + $0x20] sm:$0xff] (!%p311_p10)  ;;  %s2021_s26 = smov (!%p311_p10), 104   ;;  %s2022_s11 = smov (!%p311_p10), 8   ;;  %vm1317_vm4 = vcmask (!%p311_p10), 195584  }
  0x12   : > { %1781 = vmatprep.subr.bf16.mxu0 (!%p311_p10), %v2016_v3  ;;  %v390_v17 = vld [vmem:[%s2469_s4 + $0x38] sm:$0xff] (!%p311_p10)  ;;  %v1806_v18 = vpack.c.bf16 (!%p311_p10), %v472_v14, %v471_v13  ;;  %v474_v20 = vld [vmem:[%s2470_s5 + $0x28] sm:$0xff] (!%p311_p10)  ;;  %v391_v22 = vld [vmem:[%s2469_s4 + $0x40] sm:$0xff] (!%p311_p10)  ;;  %vm1323_vm5 = vcmask (!%p311_p10), 261120   ;;  %s1547_s16 = sshll.u32 (!%p311_p10), %s2006_s30, 7 }
  0x13   : > { %1804 = vmatpush3.bf16.msra.mxu1 (!%p311_p10), %v1803_v12  ;;  %v1788_v21 = vpack.c.bf16 (!%p311_p10), %v390_v17, %v389_v16  ;;  %v392_v23 = vld [vmem:[%s2469_s4 + $0x48] sm:$0xff] (!%p311_p10)  ;;  %v1809_v24 = vpack.c.bf16 (!%p311_p10), %v474_v20, %v473_v19  ;;  %v475_v25 = vld [vmem:[%s2470_s5 + $0x30] sm:$0xff] (!%p311_p10)  ;;  %v476_v26 = vld [vmem:[%s2470_s5 + $0x38] sm:$0xff] (!%p311_p10) }
  0x14   : > { %1805 = vmatprep.subr.bf16.mxu1 (!%p311_p10), %v2016_v3  ;;  %v1791_v27 = vpack.c.bf16 (!%p311_p10), %v392_v23, %v391_v22  ;;  %v393_v28 = vld [vmem:[%s2469_s4 + $0x50] sm:$0xff] (!%p311_p10)  ;;  %v394_v29 = vld [vmem:[%s2469_s4 + $0x58] sm:$0xff] (!%p311_p10)  ;;  %v1812_v30 = vpack.c.bf16 (!%p311_p10), %v476_v26, %v475_v25  ;;  %v477_v31 = vld [vmem:[%s2470_s5 + $0x40] sm:$0xff] (!%p311_p10) }
  0x15   : > { %1783 = vmatpush3.bf16.msra.mxu0 (!%p311_p10), %v1782_v7  ;;  %v478_v32 = vld [vmem:[%s2470_s5 + $0x48] sm:$0xff] (!%p311_p10)  ;;  %v1794_v33 = vpack.c.bf16 (!%p311_p10), %v394_v29, %v393_v28  ;;  %v395_v34 = vld [vmem:[%s2469_s4 + $0x60] sm:$0xff] (!%p311_p10)  ;;  %v479_v37 = vld [vmem:[%s2470_s5 + $0x50] sm:$0xff] (!%p311_p10) }
  0x16   : > { %1784 = vmatprep.subr.bf16.mxu0 %v2016_v3  ;;  %v396_v35 = vld [vmem:[%s2469_s4 + $0x68] sm:$0xff]  ;;  %v1815_v36 = vpack.c.bf16 %v478_v32, %v477_v31  ;;  %s363_s19 = scalar_select %p362_p11, %s2006_s30, 1  ;;  %v480_v38 = vld [vmem:[%s2470_s5 + $0x58] sm:$0xff]  ;;  %v397_v40 = vld [vmem:[%s2469_s4 + $0x70] sm:$0xff] }
  0x17   : > { %1807 = vmatpush3.bf16.msra.mxu1 %v1806_v18  ;;  %v1797_v39 = vpack.c.bf16 %v396_v35, %v395_v34  ;;  %v398_v41 = vld [vmem:[%s2469_s4 + $0x78] sm:$0xff]  ;;  %v1818_v42 = vpack.c.bf16 %v480_v38, %v479_v37  ;;  %v481_v43 = vld [vmem:[%s2470_s5 + $0x60] sm:$0xff]  ;;  %v482_v44 = vld [vmem:[%s2470_s5 + $0x68] sm:$0xff]  ;;  %s2025_s30 = smov [#allocation2]  }
  0x18   : > { %1808 = vmatprep.subr.bf16.mxu1 %v2016_v3  ;;  %s2228_s12 = sshll.u32 %s363_s19, 3  ;;  %v1800_v45 = vpack.c.bf16 %v398_v41, %v397_v40  ;;  %v555_v46 = vld [vmem:[%s2471_s6] sm:$0xff]  ;;  %v556_v47 = vld [vmem:[%s2471_s6 + $0x8] sm:$0xff]  ;;  %v1821_v48 = vpack.c.bf16 %v482_v44, %v481_v43  ;;  %v483_v49 = vld [vmem:[%s2470_s5 + $0x70] sm:$0xff]  ;;  %s1940_s24 = sshll.u32 %s2025_s30, 4  ;;  %s1941_s24 = int_to_ptr.vmem [resolvable:$false] %s1940_s24 }
  0x19   : > { %1786 = vmatpush3.bf16.msra.mxu0 %v1785_v15  ;;  %s365_s19 = scalar_lea.vmem %s2466_s1, %s2228_s12  ;;  %v484_v50 = vld [vmem:[%s2470_s5 + $0x78] sm:$0xff]  ;;  %v1827_v52 = vpack.c.bf16 %v556_v47, %v555_v46  ;;  %v557_v53 = vld [vmem:[%s2471_s6 + $0x10] sm:$0xff]  ;;  %s369_s14 = scalar_lea.vmem %s2467_s2, %s2228_s12  ;;  %v559_v57 = vld [vmem:[%s2471_s6 + $0x20] sm:$0xff] }
  0x1a   : > { %1787 = vmatprep.subr.bf16.mxu0 %v2016_v3  ;;  %v380_v51 = vld [vmem:[%s365_s19] sm:$0xff]  ;;  %v558_v54 = vld [vmem:[%s2471_s6 + $0x18] sm:$0xff]  ;;  %v1824_v55 = vpack.c.bf16 %v484_v50, %v483_v49  ;;  %v560_v58 = vld [vmem:[%s2471_s6 + $0x28] sm:$0xff]  ;;  %s376_s22 = scalar_lea.vmem %s2468_s3, %s2228_s12 }
  0x1b   : > { %1810 = vmatpush3.bf16.msra.mxu1 %v1809_v24  ;;  %v1830_v56 = vpack.c.bf16 %v558_v54, %v557_v53  ;;  %v381_v59 = vld [vmem:[%s369_s14] sm:$0xff]  ;;  %v1833_v60 = vpack.c.bf16 %v560_v58, %v559_v57  ;;  %v561_v61 = vld [vmem:[%s2471_s6 + $0x30] sm:$0xff]  ;;  %v562_v62 = vld [vmem:[%s2471_s6 + $0x38] sm:$0xff]  ;;  %s2023_s14 = smov 16  }
  0x1c   : > { %1811 = vmatprep.subr.bf16.mxu1 %v2016_v3  ;;  %v1836_v63 = vpack.c.bf16 %v562_v62, %v561_v61  ;;  %v563_v0 = vld [vmem:[%s2471_s6 + $0x40] sm:$0xff]  ;;  %v564_v1 = vld [vmem:[%s2471_s6 + $0x48] sm:$0xff]  ;;  %v565_v4 = vld [vmem:[%s2471_s6 + $0x50] sm:$0xff] }
  0x1d   : > { %1789 = vmatpush3.bf16.msra.mxu0 %v1788_v21  ;;  %v1839_v2 = vpack.c.bf16 %v564_v1, %v563_v0  ;;  %v566_v5 = vld [vmem:[%s2471_s6 + $0x58] sm:$0xff]  ;;  %v567_v8 = vld [vmem:[%s2471_s6 + $0x60] sm:$0xff]  ;;  %v568_v9 = vld [vmem:[%s2471_s6 + $0x68] sm:$0xff] }
  0x1e   : > { %1790 = vmatprep.subr.bf16.mxu0 %v2016_v3  ;;  %v1842_v7 = vpack.c.bf16 %v566_v5, %v565_v4  ;;  %v1845_v10 = vpack.c.bf16 %v568_v9, %v567_v8  ;;  %v569_v11 = vld [vmem:[%s2471_s6 + $0x70] sm:$0xff]  ;;  %v570_v12 = vld [vmem:[%s2471_s6 + $0x78] sm:$0xff]  ;;  %v382_v14 = vld [vmem:[%s376_s22] sm:$0xff]  ;;  %s2420_s22 = scalar_lea.hbm %s2473_s8, %s1547_s16 }
  0x1f   : > { %1813 = vmatpush3.bf16.msra.mxu1 %v1812_v30  ;;  %v1848_v13 = vpack.c.bf16 %v570_v12, %v569_v11  ;;  %v377_v21 = vld [vmem:[%s2465_s0] sm:$0x3] }
  0x20   : > { %1814 = vmatprep.subr.bf16.mxu1 %v2016_v3  ;;  %v378_v22 = vunpack.c.0.s8 %v377_v21 }
  0x21   : > { %1792 = vmatpush3.bf16.msra.mxu0 %v1791_v27 }
  0x22   : > { %1793 = vmatprep.subr.bf16.mxu0 %v2016_v3  ;;  %vm2340_vm2 = vcmp.eq.s32.totalorder %v378_v22, 0 }
  0x23   : > { %1816 = vmatpush3.bf16.msra.mxu1 %v1815_v36 }
  0x24   : > { %1817 = vmatprep.subr.bf16.mxu1 %v2016_v3 }
  0x25   : > { %1795 = vmatpush3.bf16.msra.mxu0 %v1794_v33 }
  0x26   : > { %1796 = vmatprep.subr.bf16.mxu0 %v2016_v3 }
  0x27   : > { %1819 = vmatpush3.bf16.msra.mxu1 %v1818_v42 }
  0x28   : > { %1820 = vmatprep.subr.bf16.mxu1 %v2016_v3 }
  0x29   : > { %1798 = vmatpush3.bf16.msra.mxu0 %v1797_v39 }
  0x2a   : > { %1799 = vmatprep.subr.bf16.mxu0 %v2016_v3 }
  0x2b   : > { %1822 = vmatpush3.bf16.msra.mxu1 %v1821_v48 }
  0x2c   : > { %1823 = vmatprep.subr.bf16.mxu1 %v2016_v3 }
  0x2d   : > { %1801 = vmatpush3.bf16.msra.mxu0 %v1800_v45 }
  0x2e   : > { %1826 = vmatprep.subr.bf16.mxu0 %v2016_v3 }
  0x2f   : > { %1825 = vmatpush3.bf16.msra.mxu1 %v1824_v55 }
  0x30   : > { %1655 = vmatmul.mubr.f32.vlgmr.msra.gmra.mrb[0].mxu0 %v380_v51  ;;  %1727 = vmatprep.subr.mxu1 %v2018_v6 }
  0x31   : > { %1828 = vmatpush3.bf16.msra.mxu0 %v1827_v52  ;;  %1724 = vmatprep.mubr.msk.f32.mxu0 %vm2017_vm0, %v2018_v6 }
  0x32   : > { %1829 = vmatprep.subr.bf16.mxu0 %v2016_v3  ;;  %1690 = vmatmul.mubr.f32.vlgmr.msra.gmra.mrb[0].mxu1 %v381_v59 }
  0x33   : > { %1729 = vmatprep.mubr.msk.f32.mxu1 %vm2017_vm0, %v2018_v6 }
  0x35   : > { %1831 = vmatpush3.bf16.msra.mxu0 %v1830_v56 }
  0x36   : > { %1832 = vmatprep.subr.bf16.mxu0 %v2016_v3 }
  0x39   : > { %1834 = vmatpush3.bf16.msra.mxu0 %v1833_v60 }
  0x3a   : > { %1835 = vmatprep.subr.bf16.mxu0 %v2016_v3 }
  0x3d   : > { %1837 = vmatpush3.bf16.msra.mxu0 %v1836_v63 }
  0x3e   : > { %1838 = vmatprep.subr.bf16.mxu0 %v2016_v3 }
  0x41   : > { %1840 = vmatpush3.bf16.msra.mxu0 %v1839_v2 }
  0x42   : > { %1841 = vmatprep.subr.bf16.mxu0 %v2016_v3 }
  0x45   : > { %1843 = vmatpush3.bf16.msra.mxu0 %v1842_v7 }
  0x46   : > { %1844 = vmatprep.subr.bf16.mxu0 %v2016_v3 }
  0x49   : > { %1846 = vmatpush3.bf16.msra.mxu0 %v1845_v10 }
  0x4a   : > { %1847 = vmatprep.subr.bf16.mxu0 %v2016_v3 }
  0x4d   : > { %1849 = vmatpush3.bf16.msra.mxu0 %v1848_v13 }
  0x4e   : > { %1850 = vmatprep.subr.bf16.mxu0 %v2016_v3 }
  0x50   : > { %1725 = vmatmul.mubr.f32.vlgmr.msra.gmra.mrb[2].mxu0 %v382_v14 }
  0x51   : > { %1775 = vmatprep.mubr.msk.f32.mxu0 %vm2017_vm0, %v2018_v6 }
 0x103   : > { %v2322_v15 = vpop.f32.mrb[0].mxu0 }
 0x104   : > { %v1656_v16 = vpop.f32.mrb[1].mxu0 }
 0x105   : > { %v551_v17 = vpop.f32.mrb[0].mxu1 }
 0x106   : > { %v1691_v18 = vpop.f32.mrb[1].mxu1  ;;  %805 = vrot.lane.b32.xlu1 %v551_v17, %s2019_s23  ;;  %1728 = vmatpush3.xpose.msk.msra.mxu1 %vm641_vm1, %v551_v17 }
 0x107   : > { %1732 = vmatprep.subr.mxu1 %v2018_v6 }
 0x123   : > { %v2327_v19 = vpop.f32.mrb[2].mxu0 }
 0x124   : > { %803 = vrot.lane.b32.xlu1 %v2327_v19, %s2019_s23  ;;  %v1726_v20 = vpop.f32.mrb[3].mxu0  ;;  %1730 = vmatmul.mubr.msk.f32.vlgmr.msra.gmra.mrb[2].mxu1 %vm641_vm1, %v2327_v19 }
 0x125   : > { %1733 = vmatpush3.msra.mxu1 %v2322_v15  ;;  %1734 = vmatprep.mubr.msk.f32.mxu1 %vm2017_vm0, %v2018_v6 }
 0x126   : > { %1737 = vmatprep.subr.mxu1 %v2018_v6 }
 0x178   : > { %v806_v35 = vpop.permute.xlu1 %805 }
 0x196   : > { %v804_v37 = vpop.permute.xlu1 %803 }
 0x1f7   : > { %v714_v24 = vpop.f32.mrb[2].mxu1 }
 0x1f8   : > { %v718_v25 = vsel %vm2340_vm2, 1e-20, %v714_v24  ;;  %v1731_v26 = vpop.f32.mrb[3].mxu1 }
 0x1f9   : > { %v719_v27 = vsel %vm641_vm1, %v718_v25, -inf  ;;  %v1321_v26 = vld [vmem:[%s2472_s7 + $0x10] sm:$0xff] }
 0x1fa   : > { %720 = vmax.xlane.f32.xlu0 %v719_v27 }
 0x287   : > { %v721_v28 = vpop.xlane.xlu0 %720 }
 0x288   : > { %v722_v29 = vsub.f32 %v718_v25, %v721_v28  ;;  %v1320_v25 = vld [vmem:[%s2472_s7 + $0x8] sm:$0xff]  ;;  %v1322_v28 = vld [vmem:[%s2472_s7 + $0x18] sm:$0xff] }
 0x28a   : > { %v723_v30 = vmul.f32 1.442695, %v722_v29  ;;  %v1854_v29 = vpack.c.bf16 %v1322_v28, %v1321_v26 }
 0x28c   : > { %1920 = vpow2.f32 %v723_v30 }
 0x296   : > { %v1921_v31 = vpop.eup %1920 }
 0x297   : > { %v725_v32 = vsel %vm641_vm1, %v1921_v31, 0.0 }
 0x298   : > { %726 = vadd.xlane.f32.xlu0 %v725_v32 }
 0x325   : > { %v727_v33 = vpop.xlane.xlu0 %726 }
 0x326   : > { %1922 = vrcp.f32 %v727_v33 }
 0x330   : > { %v1923_v34 = vpop.eup %1922 }
 0x331   : > { %v729_v36 = vmul.f32 %v1923_v34, %v1921_v31 }
 0x333   : > { %1735 = vmatmul.mubr.msk.f32.vlgmr.msra.gmra.mrb[4].mxu1 %vm641_vm1, %v729_v36 }
 0x334   : > { %1738 = vmatpush3.xpose.msk.msra.mxu1 %vm641_vm1, %v806_v35  ;;  %1739 = vmatprep.mubr.msk.f32.mxu1 %vm2017_vm0, %v2018_v6 }
 0x335   : > { %1742 = vmatprep.subr.mxu1 %v2018_v6 }
 0x337   : > { %1740 = vmatmul.mubr.msk.f32.vlgmr.msra.gmra.mrb[6].mxu1 %vm641_vm1, %v804_v37 }
 0x338   : > { %1744 = vmatprep.mubr.msk.f32.mxu1 %vm2017_vm0, %v2018_v6 }
 0x406   : > { %v2356_v38 = vpop.f32.mrb[4].mxu1 }
 0x407   : > { %v1736_v39 = vpop.f32.mrb[5].mxu1 }
 0x40a   : > { %v877_v40 = vpop.f32.mrb[6].mxu1 }
 0x40b   : > { %v881_v41 = vsel %vm2340_vm2, 1e-20, %v877_v40  ;;  %v1741_v42 = vpop.f32.mrb[7].mxu1 }
 0x40c   : > { %v882_v43 = vsel %vm641_vm1, %v881_v41, -inf }
 0x40d   : > { %883 = vmax.xlane.f32.xlu0 %v882_v43 }
 0x423   : > { %894 = vrot.lane.b32.xlu0 %v2322_v15, %s2019_s23 }
 0x427   : > { %972 = vrot.lane.b32.xlu0 %v551_v17, %s2020_s25 }
 0x42b   : > { %970 = vrot.lane.b32.xlu0 %v2327_v19, %s2020_s25 }
 0x49a   : > { %v884_v44 = vpop.xlane.xlu0 %883 }
 0x49b   : > { %v885_v45 = vsub.f32 %v881_v41, %v884_v44 }
 0x49d   : > { %v886_v46 = vmul.f32 1.442695, %v885_v45 }
 0x49e   : > { %v895_v47 = vpop.permute.xlu0 %894 }
 0x49f   : > { %1924 = vpow2.f32 %v886_v46  ;;  %1743 = vmatpush3.msra.mxu1 %v895_v47 }
 0x4a0   : > { %1747 = vmatprep.subr.mxu1 %v2018_v6 }
 0x4a2   : > { %v973_v52 = vpop.permute.xlu0 %972 }
 0x4a6   : > { %v971_v54 = vpop.permute.xlu0 %970 }
 0x4a9   : > { %v1925_v48 = vpop.eup %1924 }
 0x4aa   : > { %v888_v49 = vsel %vm641_vm1, %v1925_v48, 0.0 }
 0x4ab   : > { %889 = vadd.xlane.f32.xlu1 %v888_v49 }
 0x4bc   : > { %1060 = vrot.lane.b32.xlu1 %v2322_v15, %s2020_s25  ;;  %s2024_s25 = smov 24  }
 0x4c0   : > { %1138 = vrot.lane.b32.xlu1 %v551_v17, %s2021_s26 }
 0x538   : > { %v890_v50 = vpop.xlane.xlu1 %889 }
 0x539   : > { %1926 = vrcp.f32 %v890_v50 }
 0x53c   : > { %v1061_v55 = vpop.permute.xlu1 %1060 }
 0x540   : > { %v1139_v4 = vpop.permute.xlu1 %1138 }
 0x543   : > { %v1927_v51 = vpop.eup %1926 }
 0x544   : > { %v892_v53 = vmul.f32 %v1927_v51, %v1925_v48 }
 0x546   : > { %1745 = vmatmul.mubr.msk.f32.vlgmr.msra.gmra.mrb[8].mxu1 %vm641_vm1, %v892_v53 }
 0x547   : > { %1748 = vmatpush3.xpose.msk.msra.mxu1 %vm641_vm1, %v973_v52  ;;  %1749 = vmatprep.mubr.msk.f32.mxu1 %vm2017_vm0, %v2018_v6 }
 0x548   : > { %1752 = vmatprep.subr.mxu1 %v2018_v6 }
 0x54a   : > { %1750 = vmatmul.mubr.msk.f32.vlgmr.msra.gmra.mrb[10].mxu1 %vm641_vm1, %v971_v54 }
 0x54b   : > { %1753 = vmatpush3.msra.mxu1 %v1061_v55  ;;  %1754 = vmatprep.mubr.msk.f32.mxu1 %vm2017_vm0, %v2018_v6 }
 0x54c   : > { %1757 = vmatprep.subr.mxu1 %v2018_v6 }
 0x619   : > { %v966_v56 = vpop.f32.mrb[8].mxu1 }
 0x61a   : > { %v1746_v57 = vpop.f32.mrb[9].mxu1 }
 0x61d   : > { %v1044_v58 = vpop.f32.mrb[10].mxu1 }
 0x61e   : > { %v1048_v59 = vsel %vm2340_vm2, 1e-20, %v1044_v58  ;;  %v1751_v60 = vpop.f32.mrb[11].mxu1 }
 0x61f   : > { %v1049_v61 = vsel %vm641_vm1, %v1048_v59, -inf }
 0x620   : > { %1050 = vmax.xlane.f32.xlu0 %v1049_v61 }
 0x6ad   : > { %v1051_v62 = vpop.xlane.xlu0 %1050 }
 0x6ae   : > { %v1052_v63 = vsub.f32 %v1048_v59, %v1051_v62 }
 0x6b0   : > { %v1053_v0 = vmul.f32 1.442695, %v1052_v63 }
 0x6b2   : > { %1928 = vpow2.f32 %v1053_v0 }
 0x6bc   : > { %v1929_v1 = vpop.eup %1928 }
 0x6bd   : > { %v1055_v2 = vsel %vm641_vm1, %v1929_v1, 0.0 }
 0x6be   : > { %1056 = vadd.xlane.f32.xlu1 %v1055_v2 }
 0x6cf   : > { %1136 = vrot.lane.b32.xlu1 %v2327_v19, %s2021_s26 }
 0x74b   : > { %v1057_v5 = vpop.xlane.xlu1 %1056 }
 0x74c   : > { %1930 = vrcp.f32 %v1057_v5 }
 0x74f   : > { %v1137_v9 = vpop.permute.xlu1 %1136 }
 0x756   : > { %v1931_v7 = vpop.eup %1930 }
 0x757   : > { %v1059_v8 = vmul.f32 %v1931_v7, %v1929_v1 }
 0x759   : > { %1755 = vmatmul.mubr.msk.f32.vlgmr.msra.gmra.mrb[12].mxu1 %vm641_vm1, %v1059_v8 }
 0x75a   : > { %1758 = vmatpush3.xpose.msk.msra.mxu1 %vm641_vm1, %v1139_v4  ;;  %1759 = vmatprep.mubr.msk.f32.mxu1 %vm2017_vm0, %v2018_v6 }
 0x75b   : > { %1762 = vmatprep.subr.mxu1 %v2018_v6 }
 0x75d   : > { %1760 = vmatmul.mubr.msk.f32.vlgmr.msra.gmra.mrb[14].mxu1 %vm641_vm1, %v1137_v9 }
 0x75e   : > { %1764 = vmatprep.mubr.msk.f32.mxu1 %vm2017_vm0, %v2018_v6 }
 0x82c   : > { %v1132_v10 = vpop.f32.mrb[12].mxu1 }
 0x82d   : > { %v1756_v11 = vpop.f32.mrb[13].mxu1 }
 0x830   : > { %v1210_v12 = vpop.f32.mrb[14].mxu1 }
 0x831   : > { %v1214_v13 = vsel %vm2340_vm2, 1e-20, %v1210_v12  ;;  %v1761_v14 = vpop.f32.mrb[15].mxu1 }
 0x832   : > { %v1215_v16 = vsel %vm641_vm1, %v1214_v13, -inf }
 0x833   : > { %1216 = vmax.xlane.f32.xlu0 %v1215_v16 }
 0x849   : > { %1226 = vrot.lane.b32.xlu0 %v2322_v15, %s2021_s26  ;;  %v1319_v15 = vld [vmem:[%s2472_s7] sm:$0xff]  ;;  %s355_s26 = sand.u32 1, %s1998_s28  }
 0x84a   : > { %v1851_v27 = vpack.c.bf16 %v1320_v25, %v1319_v15  ;;  %s1399_s23 = scalar_lea.sflag [#allocation3], %s355_s26 }
 0x84c   : > { %1852 = vmatpush3.bf16.msra.mxu0 %v1851_v27 }
 0x84d   : > { %1303 = vrot.lane.b32.xlu0 %v966_v56, %s2022_s11  ;;  %1853 = vmatprep.subr.bf16.mxu0 %v2016_v3  ;;  %s1529_s11 = sshll.u32 %s355_s26, 3 }
 0x850   : > { %1855 = vmatpush3.bf16.msra.mxu0 %v1854_v29 }
 0x851   : > { %1307 = vrot.lane.b32.xlu0 %v1132_v10, %s2023_s14  ;;  %s357_s14 = scalar_lea.vmem [#allocation2], %s1529_s11 }
 0x852   : > { %s1413_s19 = sshll.u32 %s357_s14, 4  ;;  %s2415_s19 = int_to_ptr.vmem [resolvable:$true] %s1413_s19 }
 0x853   : > { %s1936_s12 = scalar_lea.vmem %s2415_s19, 128  ;;  %p1943_p1 = scmp.lt.s32.totalorder %s2415_s19, %s1941_s24 }
 0x854   : > { %p1937_p12 = scmp.ne.s32.totalorder %s2415_s19, %s1936_s12 }
 0x856   : > { %p1938_p13 = pnand %p1937_p12, %p2111_p4 }
 0x858   : > { %p1939_p0 = pneg %p1938_p13 }
 0x8c0   : > { %v1217_v17 = vpop.xlane.xlu0 %1216 }
 0x8c1   : > { %v1218_v18 = vsub.f32 %v1214_v13, %v1217_v17 }
 0x8c3   : > { %v1219_v6 = vmul.f32 1.442695, %v1218_v18 }
 0x8c4   : > { %v1227_v19 = vpop.permute.xlu0 %1226 }
 0x8c5   : > { %1932 = vpow2.f32 %v1219_v6  ;;  %1763 = vmatpush3.msra.mxu1 %v1227_v19 }
 0x8c8   : > { %v1304_v32 = vpop.permute.xlu0 %1303 }
 0x8c9   : > { %v1314_v34 = vsel %vm641_vm1, %v2356_v38, %v1304_v32 }
 0x8cc   : > { %v1308_v33 = vpop.permute.xlu0 %1307 }
 0x8cd   : > { %v1316_v35 = vsel %vm1315_vm3, %v1314_v34, %v1308_v33 }
 0x8cf   : > { %v1933_v20 = vpop.eup %1932 }
 0x8d0   : > { %v1221_v21 = vsel %vm641_vm1, %v1933_v20, 0.0 }
 0x8d1   : > { %1222 = vadd.xlane.f32.xlu1 %v1221_v21 }
 0x95e   : > { %v1223_v22 = vpop.xlane.xlu1 %1222 }
 0x95f   : > { %1934 = vrcp.f32 %v1223_v22 }
 0x969   : > { %v1935_v23 = vpop.eup %1934 }
 0x96a   : > { %v1225_v24 = vmul.f32 %v1935_v23, %v1933_v20 }
 0x96c   : > { %1765 = vmatmul.mubr.msk.f32.vlgmr.msra.gmra.mrb[16].mxu1 %vm641_vm1, %v1225_v24 }
 0xa3f   : > { %v1298_v30 = vpop.f32.mrb[16].mxu1 }
 0xa40   : > { %1311 = vrot.lane.b32.xlu0 %v1298_v30, %s2024_s25  ;;  %v1766_v31 = vpop.f32.mrb[17].mxu1  ;;  %s1942_s25 = scalar_lea.vmem %s1941_s24, 256 }
 0xa41   : > { %p1944_p2 = scmp.lt.s32.totalorder %s1942_s25, %s1936_s12 }
 0xa43   : > { %p1945_p3 = por %p1944_p2, %p1943_p1 }
 0xa45   : > { %p1946_p5 = pnand %p1945_p3, %p1939_p0 }
 0xab2   : > { %v1312_v36 = vpop.permute.xlu0 %1311 }
 0xab3   : > { %v1318_v37 = vsel %vm1317_vm4, %v1316_v35, %v1312_v36 }
 0xab4   : > { %1776 = vmatmul.mubr.msk.f32.vlgmr.msra.gmra.mrb[4].mxu0 %vm1323_vm5, %v1318_v37 }
 0xb87   : > { %v1393_v3 = vpop.f32.mrb[4].mxu0 }
 0xb88   : > { %1397 = vst [vmem:[%s357_s14] sm:$0xff] %v1393_v3  ;;  %v1777_v38 = vpop.f32.mrb[5].mxu0 }
 0xb89   : > { %1949 = shalt.err (!%p1946_p5)
}
 0xb8a   : > { %s1950_s26 = scalar_lea.hbm %s2420_s22, 128  ;;  %s1954_s16 = scalar_lea.hbm %s2473_s8, 256 }
 0xb8b   : > { %p1951_p6 = scmp.ne.s32.totalorder %s2420_s22, %s1950_s26  ;;  %p1955_p10 = scmp.lt.u32.totalorder %s2420_s22, %s2473_s8 }
 0xb8c   : > { %p1956_p11 = scmp.lt.u32.totalorder %s1954_s16, %s1950_s26  ;;  %p1958_p13 = scmp.lt.u32.totalorder %s1950_s26, %s2420_s22 }
 0xb8d   : > { %p1952_p7 = pnand %p1951_p6, %p2111_p4 }
 0xb8e   : > { %p1957_p12 = por %p1956_p11, %p1955_p10 }
 0xb8f   : > { %p1953_p9 = pneg %p1952_p7 }
 0xb90   : > { %p1959_p0 = por %p1958_p13, %p1957_p12 }
 0xb92   : > { %p1960_p1 = pnand %p1959_p0, %p1953_p9 }
 0xb94   : > { %1963 = shalt.err (!%p1960_p1)
}
 0xb95   : > { %1856 = dma.vmem_to_hbm [thread:$0]  (%p2111_p4), %s2415_s19, 128, %s2420_s22, %s1399_s23  }
 0xb96 PF: > { %p1862_p2 = scmp.ge.s32.totalorder %s2014_s10, 2  ;;  %s1425_s12 = sand.u32 1, %s1994_s27  }
 0xb97   : > { %s1426_s30 = scalar_lea.sflag [#allocation3], %s1425_s12 }
 0xb98   : > { %p1859_p3 = pnand %p1862_p2, %p2118_p8 }
 0xb9a   : > { %1989 = dma.done.wait (!%p1859_p3), %s1426_s30, 128  }
 0xb9b   : > { %1991 = vsyncadd (!%p1859_p3), %s1426_s30, 4294967168  ;;  %s21_s10 = sadd.s32 1, %s2014_s10   ;;  %s2478_s27 = smov %s1998_s28 }
 0xb9c   : > { %p18_p5 = scmp.ge.s32.totalorder %s21_s10, 4   ;;  %s2479_s28 = smov %s2002_s29 }
 0xb9d   : > { %s2480_s29 = smov %s2124_s18  ;;  %s2481_s30 = smov %s2010_s9 }
 0xb9e   : > { %s2482_s9 = smov %s2484_s13  ;;  %20 = sbr.rel (!%p18_p5) target bundleno = 4 (0x4), region = 96 }
 0xba5   :  { %1431 = vsyncpa [#allocation3], 1 }
 0xba6   :  { %1433 = vsyncpa [#allocation3 + $0x1], 1 }

</bundles_post_ra>
